<compile_context>
chip_gen: v7x
topology: tpu7x:2x2x1
jax: 0.10.0
libtpu: 0.0.40
codegen_flags: <defaults>
</compile_context>

<pallas_src>
import math

import jax
import jax.numpy as jnp
from jax.experimental import pallas as pl
from jax.experimental.pallas import tpu as pltpu


# ----------------------------------------------------------------------------- helpers
def _leaky_relu(x, negative_slope):
    # max(x, a*x) == leaky_relu(x) for 0 <= a <= 1 -> mul+max (2 VALU ops) instead of
    # compare+select+mul (3 VALU ops).
    if 0.0 <= negative_slope <= 1.0:
        return jnp.maximum(x, negative_slope * x)
    return jnp.where(x >= 0, x, negative_slope * x)


def _sigmoid_tanh(x):
    # sigmoid(x) = 0.5 * (tanh(x/2) + 1): a single EUP push per element
    # (vs exp + reciprocal = two pushes on the single EUP slot).
    return 0.5 * (jnp.tanh(0.5 * x) + 1.0)


def _default_vmem_budget():
    """~3/4 of physical VMEM; conservative 48 MiB fallback (fits v7x's 64 MiB)."""
    cap = 64 * 1024 * 1024
    try:
        cap = int(pltpu.get_tpu_info().vmem_capacity_bytes)
    except Exception:
        pass
    return max(32 * 1024 * 1024, (cap * 3) // 4)


def _default_epilogue_dtype():
    """bf16 epilogue on v6e/v7x (bf16 VALU packs 2 elem/lane); f32 on v5e (no bf16 VPU)."""
    try:
        kind = jax.devices()[0].device_kind.lower()
        if "v5" in kind:
            return jnp.float32
    except Exception:
        pass
    return jnp.bfloat16


def _vmem_estimate(tm, dims, out_itemsize):
    """VMEM bytes for one grid step, incl. pipeline double buffers and live activations."""
    d0 = dims[0]
    num_layers = len(dims) - 1
    w_bytes = sum(dims[i] * dims[i + 1] for i in range(num_layers)) * 2  # bf16 weights
    x_tile = tm * d0 * 4                                                 # f32 input tile
    o_tile = tm * d0 * out_itemsize                                      # output tile
    # Simultaneously live: f32 accumulator + bf16 activation + epilogue temp.
    act = tm * max(dims) * (4 + 2 + 2)
    # Every BlockSpec operand is double-buffered by the pipeline (weights too, even
    # though their constant index_map means they are only DMA'd once).
    return 2 * (x_tile + o_tile + w_bytes) + act


def _choose_tm(B, dims, block_m, budget, out_itemsize):
    tm = min(block_m, B)
    if tm < B:
        tm = max(8, (tm // 8) * 8)           # block height must be a multiple of 8
    while tm > 8 and _vmem_estimate(tm, dims, out_itemsize) > budget:
        nt = max(8, ((tm // 2) // 8) * 8)
        if nt >= tm:
            break
        tm = nt
    return tm


def prepare_weights(weights):
    """One-time setup: cast weights to bf16 so the per-call forward never re-casts."""
    return [w.astype(jnp.bfloat16) for w in weights]


# ----------------------------------------------------------------------------- kernel
def _make_kernel(num_layers, negative_slope, epilogue_dtype):
    """Kernel ref order: x_ref (f32), w_0..w_{L-1} (PyTorch (out, in) layout, bf16), o_ref."""

    def kernel(*refs):
        x_ref = refs[0]
        w_refs = refs[1:1 + num_layers]
        o_ref = refs[1 + num_layers]

        # In-kernel cast: the VPU cast hides under the first MXU matmul.
        h = x_ref[...].astype(jnp.bfloat16)                  # (tm, d0)

        # ---- encoder: h @ W_i^T via transposed contraction (no W^T copy shipped) ----
        for i in range(num_layers):
            acc = jax.lax.dot_general(
                h, w_refs[i][...],
                dimension_numbers=(((1,), (1,)), ((), ())),  # contract in_features dims
                preferred_element_type=jnp.float32)          # f32 accumulation on MXU
            # dropout == identity in eval mode
            h = _leaky_relu(acc.astype(epilogue_dtype),
                            negative_slope).astype(jnp.bfloat16)

        # ---- tied decoder: h @ W_i, weights in reverse order ----
        for j, li in enumerate(range(num_layers - 1, -1, -1)):
            acc = jnp.dot(h, w_refs[li][...],
                          preferred_element_type=jnp.float32)
            if j < num_layers - 1:
                h = _leaky_relu(acc.astype(epilogue_dtype),
                                negative_slope).astype(jnp.bfloat16)
            else:
                o_ref[...] = _sigmoid_tanh(acc).astype(o_ref.dtype)

    return kernel


# ----------------------------------------------------------------------------- wrapper
def leaky_linear_ae_forward(x, weights, negative_slope=0.1, block_m=512,
                            vmem_budget_bytes=None, out_dtype=jnp.float32,
                            epilogue_dtype=None):
    """x: (B, D0) float32. weights: list of (d_{i+1}, d_i) arrays (PyTorch layout),
    ideally pre-cast to bf16 via prepare_weights()."""
    B, D0 = x.shape
    num_layers = len(weights)
    dims = [D0] + [int(w.shape[0]) for w in weights]
    for i, w in enumerate(weights):
        assert int(w.shape[1]) == dims[i], "weight shapes must chain (out_i, in_i)"

    if vmem_budget_bytes is None:
        vmem_budget_bytes = _default_vmem_budget()
    if epilogue_dtype is None:
        epilogue_dtype = _default_epilogue_dtype()

    # MXU inputs are bf16 (f32 accumulation via preferred_element_type). Casting here
    # is a no-op when the caller pre-cast at setup time (prepare_weights).
    ws = [w if w.dtype == jnp.bfloat16 else w.astype(jnp.bfloat16) for w in weights]

    out_itemsize = jnp.dtype(out_dtype).itemsize

    # ---- batch-tile selection (largest tile fitting the VMEM budget) ----
    tm = _choose_tm(B, dims, max(block_m, 8), vmem_budget_bytes, out_itemsize)
    grid = (pl.cdiv(B, tm),)   # partial last block handled by Pallas (masked writeback)

    kernel = _make_kernel(num_layers, negative_slope, epilogue_dtype)

    in_specs = [pl.BlockSpec((tm, D0), lambda i: (i, 0))]
    for w in ws:
        # Full-array weight block with constant index_map: DMA'd once, then resident.
        in_specs.append(pl.BlockSpec(w.shape, lambda i: (0, 0)))
    out_spec = pl.BlockSpec((tm, D0), lambda i: (i, 0))

    # Advisory cost estimate so XLA schedules surrounding ops sensibly.
    matmul_flops = 2 * sum(2 * B * dims[i] * dims[i + 1] for i in range(num_layers))
    cost = pl.CostEstimate(
        flops=matmul_flops,
        transcendentals=B * D0,  # tanh in the final sigmoid
        bytes_accessed=(int(x.size) * 4
                        + sum(int(w.size) * 2 for w in ws)
                        + B * D0 * out_itemsize),
    )

    out = pl.pallas_call(
        kernel,
        out_shape=jax.ShapeDtypeStruct((B, D0), out_dtype),
        grid_spec=pltpu.PrefetchScalarGridSpec(
            num_scalar_prefetch=0,
            grid=grid,
            in_specs=in_specs,
            out_specs=out_spec,
        ),
        compiler_params=pltpu.CompilerParams(
            dimension_semantics=("parallel",),   # batch axis -> megacore-shardable
            vmem_limit_bytes=int(vmem_budget_bytes),
        ),
        cost_estimate=cost,
    )(x, *ws)

    return out


# ----------------------------------------------------------------------------- reference
def _reference_forward(x, weights, negative_slope=0.1, epilogue_dtype=jnp.bfloat16,
                       out_dtype=jnp.float32):
    """Pure-JAX reference mirroring the kernel's precision scheme exactly."""
    h = x.astype(jnp.bfloat16)
    ws = [w.astype(jnp.bfloat16) for w in weights]
    for w in ws:
        a = jax.lax.dot_general(h, w,
                                dimension_numbers=(((1,), (1,)), ((), ())),
                                preferred_element_type=jnp.float32)
        h = _leaky_relu(a.astype(epilogue_dtype), negative_slope).astype(jnp.bfloat16)
    out = None
    for j, w in enumerate(ws[::-1]):
        a = jnp.dot(h, w, preferred_element_type=jnp.float32)
        if j < len(ws) - 1:
            h = _leaky_relu(a.astype(epilogue_dtype), negative_slope).astype(jnp.bfloat16)
        else:
            out = _sigmoid_tanh(a).astype(out_dtype)
    return out


if __name__ == "__main__":
    # Small shapes consistent with the module: input_dim_list=[256, 128, 64], batch=8.
    input_dim_list = [256, 128, 64]
    batch = 8
    negative_slope = 0.1

    key = jax.random.PRNGKey(0)
    kx, *kws = jax.random.split(key, len(input_dim_list))

    x = jax.random.normal(kx, (batch, input_dim_list[0]), dtype=jnp.float32)

    # Deterministic init, PyTorch-Linear-style uniform(-1/sqrt(fan_in), 1/sqrt(fan_in)).
    weights_f32 = []
    for i, kw in enumerate(kws):
        fan_in = input_dim_list[i]
        fan_out = input_dim_list[i + 1]
        bound = 1.0 / math.sqrt(fan_in)
        weights_f32.append(jax.random.uniform(
            kw, (fan_out, fan_in), dtype=jnp.float32, minval=-bound, maxval=bound))

    # One-time setup cast (hoisted out of the per-call forward path).
    weights = prepare_weights(weights_f32)
    epi_dtype = _default_epilogue_dtype()

    out = leaky_linear_ae_forward(x, weights, negative_slope=negative_slope,
                                  epilogue_dtype=epi_dtype)
    out = jax.block_until_ready(out)

    ref = _reference_forward(x, weights, negative_slope=negative_slope,
                             epilogue_dtype=epi_dtype)
    assert out.shape == (batch, input_dim_list[0])
    max_err = float(jnp.max(jnp.abs(out - ref)))
    assert bool(jnp.allclose(out, ref, atol=1e-2, rtol=1e-2)), max_err

    print("KERNEL_OK")
</pallas_src>

<mosaic_0001>
module attributes {stable_mosaic.version = 11 : i64} {
  func.func @kernel(%arg0: i32, %arg1: memref<8x256xf32, #tpu.memory_space<vmem>>, %arg2: memref<128x256xbf16, #tpu.memory_space<vmem>>, %arg3: memref<64x128xbf16, #tpu.memory_space<vmem>>, %arg4: memref<8x256xf32, #tpu.memory_space<vmem>>) attributes {dimension_semantics = [#tpu.dimension_semantics<parallel>], iteration_bounds = array<i64: 1>, scalar_prefetch = 0 : i64, scratch_operands = 0 : i64, tpu.core_type = #tpu.core_type<tc>, window_params = [{transform_indices = @transform_0, window_bounds = array<i64: 8, 256>}, {pipeline_mode = #tpu.pipeline_mode<synchronous>, transform_indices = @transform_1, window_bounds = array<i64: 128, 256>}, {pipeline_mode = #tpu.pipeline_mode<synchronous>, transform_indices = @transform_2, window_bounds = array<i64: 64, 128>}, {transform_indices = @transform_3, window_bounds = array<i64: 8, 256>}]} {
    %c0 = arith.constant 0 : index
    %c0_0 = arith.constant 0 : index
    %0 = vector.load %arg1[%c0, %c0_0] : memref<8x256xf32, #tpu.memory_space<vmem>>, vector<8x256xf32>
    %1 = arith.truncf %0 : vector<8x256xf32> to vector<8x256xbf16>
    %c0_1 = arith.constant 0 : index
    %c0_2 = arith.constant 0 : index
    %2 = vector.load %arg2[%c0_1, %c0_2] : memref<128x256xbf16, #tpu.memory_space<vmem>>, vector<128x256xbf16>
    %cst = arith.constant dense<0.000000e+00> : vector<8x128xf32>
    %3 = tpu.matmul %1, %2, %cst {dimension_numbers = #tpu.dot_dimension_numbers<[1], [1], [0], [0], [0, 0, 1, 0], [], []>} : vector<8x256xbf16>, vector<128x256xbf16>, vector<8x128xf32> -> vector<8x128xf32>
    %4 = arith.truncf %3 : vector<8x128xf32> to vector<8x128xbf16>
    %cst_3 = arith.constant 1.000980e-01 : bf16
    %5 = vector.broadcast %cst_3 : bf16 to vector<8x128xbf16>
    %6 = arith.mulf %5, %4 : vector<8x128xbf16>
    %7 = arith.maximumf %4, %6 : vector<8x128xbf16>
    %c0_4 = arith.constant 0 : index
    %c0_5 = arith.constant 0 : index
    %8 = vector.load %arg3[%c0_4, %c0_5] : memref<64x128xbf16, #tpu.memory_space<vmem>>, vector<64x128xbf16>
    %cst_6 = arith.constant dense<0.000000e+00> : vector<8x64xf32>
    %9 = tpu.matmul %7, %8, %cst_6 {dimension_numbers = #tpu.dot_dimension_numbers<[1], [1], [0], [0], [0, 0, 1, 0], [], []>} : vector<8x128xbf16>, vector<64x128xbf16>, vector<8x64xf32> -> vector<8x64xf32>
    %10 = arith.truncf %9 : vector<8x64xf32> to vector<8x64xbf16>
    %cst_7 = arith.constant 1.000980e-01 : bf16
    %11 = vector.broadcast %cst_7 : bf16 to vector<8x64xbf16>
    %12 = arith.mulf %11, %10 : vector<8x64xbf16>
    %13 = arith.maximumf %10, %12 : vector<8x64xbf16>
    %c0_8 = arith.constant 0 : index
    %c0_9 = arith.constant 0 : index
    %14 = vector.load %arg3[%c0_8, %c0_9] : memref<64x128xbf16, #tpu.memory_space<vmem>>, vector<64x128xbf16>
    %cst_10 = arith.constant dense<0.000000e+00> : vector<8x128xf32>
    %15 = tpu.matmul %13, %14, %cst_10 {dimension_numbers = #tpu.dot_dimension_numbers<[1], [0], [0], [1], [0, 0, 1, 1], [], []>} : vector<8x64xbf16>, vector<64x128xbf16>, vector<8x128xf32> -> vector<8x128xf32>
    %16 = arith.truncf %15 : vector<8x128xf32> to vector<8x128xbf16>
    %cst_11 = arith.constant 1.000980e-01 : bf16
    %17 = vector.broadcast %cst_11 : bf16 to vector<8x128xbf16>
    %18 = arith.mulf %17, %16 : vector<8x128xbf16>
    %19 = arith.maximumf %16, %18 : vector<8x128xbf16>
    %c0_12 = arith.constant 0 : index
    %c0_13 = arith.constant 0 : index
    %20 = vector.load %arg2[%c0_12, %c0_13] : memref<128x256xbf16, #tpu.memory_space<vmem>>, vector<128x256xbf16>
    %cst_14 = arith.constant dense<0.000000e+00> : vector<8x256xf32>
    %21 = tpu.matmul %19, %20, %cst_14 {dimension_numbers = #tpu.dot_dimension_numbers<[1], [0], [0], [1], [0, 0, 1, 1], [], []>} : vector<8x128xbf16>, vector<128x256xbf16>, vector<8x256xf32> -> vector<8x256xf32>
    %cst_15 = arith.constant 5.000000e-01 : f32
    %22 = vector.broadcast %cst_15 : f32 to vector<8x256xf32>
    %23 = arith.mulf %22, %21 : vector<8x256xf32>
    %24 = math.tanh %23 : vector<8x256xf32>
    %cst_16 = arith.constant 1.000000e+00 : f32
    %25 = vector.broadcast %cst_16 : f32 to vector<8x256xf32>
    %26 = arith.addf %24, %25 : vector<8x256xf32>
    %cst_17 = arith.constant 5.000000e-01 : f32
    %27 = vector.broadcast %cst_17 : f32 to vector<8x256xf32>
    %28 = arith.mulf %27, %26 : vector<8x256xf32>
    %c0_18 = arith.constant 0 : index
    %c0_19 = arith.constant 0 : index
    %29 = vector.load %arg4[%c0_18, %c0_19] : memref<8x256xf32, #tpu.memory_space<vmem>>, vector<8x256xf32>
    tpu.vector_store %arg4[%c0_18, %c0_19], %28 {strides = array<i32>} : memref<8x256xf32, #tpu.memory_space<vmem>>, vector<8x256xf32>,
    return
  }
  func.func @transform_0(%arg0: i32) -> (i32, i32) {
    %c0_i32 = arith.constant 0 : i32
    %c0_i32_0 = arith.constant 0 : i32
    return %arg0, %c0_i32 : i32, i32
  }
  func.func @transform_1(%arg0: i32) -> (i32, i32) {
    %c0_i32 = arith.constant 0 : i32
    %c0_i32_0 = arith.constant 0 : i32
    %c0_i32_1 = arith.constant 0 : i32
    return %c0_i32, %c0_i32_0 : i32, i32
  }
  func.func @transform_2(%arg0: i32) -> (i32, i32) {
    %c0_i32 = arith.constant 0 : i32
    %c0_i32_0 = arith.constant 0 : i32
    %c0_i32_1 = arith.constant 0 : i32
    return %c0_i32, %c0_i32_0 : i32, i32
  }
  func.func @transform_3(%arg0: i32) -> (i32, i32) {
    %c0_i32 = arith.constant 0 : i32
    %c0_i32_0 = arith.constant 0 : i32
    return %arg0, %c0_i32 : i32, i32
  }
}

</mosaic_0001>

<bundles_post_ra>
// kernel: tpu_custom_call.1
= control target key start
LH: loop header
LB: loop body
LE: loop exit
PB: predicated region body
PF: predicated region fallthrough
CT: control target
= control target key end

     0   :  { %8 = vsyncpa [#allocation3], 0  ;;  %s697_s0 = inlined_call_operand.hbm [shape: f32[8,256], index: 0, kind: input, shape index: {}]   ;;  %s698_s1 = inlined_call_operand.hbm [shape: bf16[128,256], index: 1, kind: input, shape index: {}]   ;;  %s699_s2 = inlined_call_operand.hbm [shape: bf16[64,128], index: 2, kind: input, shape index: {}]   ;;  %s700_s3 = inlined_call_operand.hbm [shape: f32[8,256], index: 3, kind: output, shape index: {}]  }
   0x1   :  { %9 = vsyncpa [#allocation6], 0 }
   0x2   :  { %10 = vsyncpa [#allocation4], 0  ;;  %s580_s12 = smov [#allocation5]   ;;  %s486_s16 = scalar_lea.hbm %s698_s1, 2048 }
   0x3   :  { %s26_s13 = sshll.u32 %s580_s12, 4  ;;  %p487_p0 = scmp.ne.s32.totalorder %s698_s1, %s486_s16  ;;  %s27_s13 = int_to_ptr.vmem [resolvable:$true] %s26_s13 }
   0x4   :  { %p490_p1 = scmp.lt.u32.totalorder %s486_s16, %s698_s1 }
   0x6   :  { %p492_p2 = pnand %p490_p1, %p487_p0 }
   0x8   :  { %495 = shalt.err (!%p492_p2)
}
   0x9   :  { %s496_s21 = scalar_lea.vmem %s27_s13, 2048  ;;  %p501_p4 = scmp.lt.s32.totalorder %s27_s13, %s27_s13 }
   0xa   :  { %p497_p3 = scmp.ne.s32.totalorder %s27_s13, %s496_s21  ;;  %p502_p5 = scmp.lt.s32.totalorder %s496_s21, %s496_s21 }
   0xc   :  { %p503_p6 = por %p502_p5, %p501_p4 }
   0xe   :  { %p504_p7 = pnand %p503_p6, %p497_p3 }
  0x10   :  { %507 = shalt.err (!%p504_p7)
}
  0x11   :  { %s581_s22 = smov 128   ;;  %s582_s23 = smov 8  }
  0x12   :  { %32 = dma.hbm_to_vmem [thread:$0]  %s698_s1, 2048, %s27_s13, [#allocation6], %s581_s22, %s581_s22, %s582_s23  }
  0x13   :  { %s583_s26 = smov [#allocation2]   ;;  %s584_s28 = smov [#allocation7]  }
  0x14   :  { %s17_s27 = sshll.u32 %s583_s26, 4  ;;  %s38_s29 = sshll.u32 %s584_s28, 4  ;;  %s18_s27 = int_to_ptr.vmem [resolvable:$true] %s17_s27  ;;  %s39_s29 = int_to_ptr.vmem [resolvable:$true] %s38_s29 }
  0x15   :  { %s508_s5 = scalar_lea.hbm %s697_s0, 256 }
  0x16   :  { %p509_p8 = scmp.ne.s32.totalorder %s697_s0, %s508_s5  ;;  %p512_p9 = scmp.lt.u32.totalorder %s508_s5, %s697_s0 }
  0x18   :  { %p514_p10 = pnand %p512_p9, %p509_p8 }
  0x1a   :  { %517 = shalt.err (!%p514_p10)
}
  0x1b   :  { %s518_s1 = scalar_lea.vmem %s18_s27, 256  ;;  %p523_p12 = scmp.lt.s32.totalorder %s18_s27, %s18_s27 }
  0x1c   :  { %p519_p11 = scmp.ne.s32.totalorder %s18_s27, %s518_s1  ;;  %p524_p13 = scmp.lt.s32.totalorder %s518_s1, %s518_s1 }
  0x1e   :  { %p525_p0 = por %p524_p13, %p523_p12 }
  0x20   :  { %p526_p1 = pnand %p525_p0, %p519_p11 }
  0x22   :  { %529 = shalt.err (!%p526_p1)
}
  0x23   :  { %20 = dma.hbm_to_vmem [thread:$0]  %s697_s0, 256, %s18_s27, [#allocation3]  }
  0x24   :  { %s530_s14 = scalar_lea.hbm %s699_s2, 512 }
  0x25   :  { %p531_p2 = scmp.ne.s32.totalorder %s699_s2, %s530_s14  ;;  %p534_p3 = scmp.lt.u32.totalorder %s530_s14, %s699_s2 }
  0x27   :  { %p536_p4 = pnand %p534_p3, %p531_p2 }
  0x29   :  { %539 = shalt.err (!%p536_p4)
}
  0x2a   :  { %s540_s19 = scalar_lea.vmem %s39_s29, 512  ;;  %p545_p6 = scmp.lt.s32.totalorder %s39_s29, %s39_s29 }
  0x2b   :  { %p541_p5 = scmp.ne.s32.totalorder %s39_s29, %s540_s19  ;;  %p546_p7 = scmp.lt.s32.totalorder %s540_s19, %s540_s19 }
  0x2d   :  { %p547_p8 = por %p546_p7, %p545_p6 }
  0x2f   :  { %p548_p9 = pnand %p547_p8, %p541_p5 }
  0x31   :  { %551 = shalt.err (!%p548_p9)
}
  0x32   :  { %s585_s0 = smov 64   ;;  %s586_s20 = smov 4  }
  0x33   :  { %44 = dma.hbm_to_vmem [thread:$0]  %s699_s2, 512, %s39_s29, [#allocation6], %s585_s0, %s585_s0, %s586_s20  }
  0x34   :  { %574 = dma.done.wait [#allocation3], 256  }
  0x35   :  { %575 = vsyncadd [#allocation3], 4294967040 }
  0x36   :  { %576 = dma.done.wait [#allocation6], 2560  }
  0x37   :  { %577 = vsyncadd [#allocation6], 4294964736  ;;  %v587_v0 = vmov 0.0   ;;  %v648_v1 = vld [vmem:[#allocation5 + $0x4] ss:$8 sps:$4 sm:$0xff]   ;;  %v57_v6 = vld [vmem:[#allocation2 + $0x8] sm:$0xff] }
  0x38   :  { %419 = vmatprep.subr.bf16.mxu1 %v587_v0  ;;  %v650_v2 = vld [vmem:[#allocation5] ss:$8 sps:$4 sm:$0xff]   ;;  %156 = vmatprep.subr.bf16.mxu0 %v648_v1  ;;  %v653_v3 = vld [vmem:[#allocation5 + $0x14] ss:$8 sps:$4 sm:$0xff]   ;;  %v657_v4 = vld [vmem:[#allocation5 + $0x10] ss:$8 sps:$4 sm:$0xff]   ;;  %v59_v7 = vpack.c.bf16 %v57_v6, %v57_v6 }
  0x39   :  { %157 = vmatpush1.bf16.xpose.msra.mxu0 %v650_v2  ;;  %v659_v5 = vld [vmem:[#allocation5 + $0x24] ss:$8 sps:$4 sm:$0xff]   ;;  %v663_v9 = vld [vmem:[#allocation5 + $0x20] ss:$8 sps:$4 sm:$0xff]   ;;  %v666_v10 = vld [vmem:[#allocation5 + $0x34] ss:$8 sps:$4 sm:$0xff]  }
  0x3a   :  { %158 = vmatprep.subr.bf16.mxu0 %v653_v3  ;;  %v478_v8 = vld [vmem:[#allocation7] sm:$0xff]   ;;  %188 = vmatprep.mubr.bf16.mxu0 %v59_v7  ;;  %v479_v11 = vld [vmem:[#allocation7 + $0x8] sm:$0xff]   ;;  %v465_v12 = vld [vmem:[#allocation5 + $0x30] ss:$8 sps:$4 sm:$0xff]   ;;  %vm588_vm0 = vmmov 0   ;;  %vm274_vm1 = vcmask 523264  }
  0x3b   :  { %420 = vmatpush3.bf16.xpose.msra.mxu1 %v478_v8  ;;  %v466_v13 = vld [vmem:[#allocation5 + $0x44] ss:$8 sps:$4 sm:$0xff]   ;;  %v480_v14 = vld [vmem:[#allocation7 + $0x10] sm:$0xff]   ;;  %v468_v15 = vld [vmem:[#allocation5 + $0x40] ss:$8 sps:$4 sm:$0xff]   ;;  %427 = vmatprep.mubr.msk.bf16.mxu1 %vm588_vm0, %v587_v0  ;;  %v589_v39 = vmov 0  }
  0x3c   :  { %421 = vmatprep.subr.bf16.mxu1 %v587_v0  ;;  %v469_v16 = vld [vmem:[#allocation5 + $0x54] ss:$8 sps:$4 sm:$0xff]   ;;  %v471_v17 = vld [vmem:[#allocation5 + $0x50] ss:$8 sps:$4 sm:$0xff]   ;;  %v472_v18 = vld [vmem:[#allocation5 + $0x64] ss:$8 sps:$4 sm:$0xff]  }
  0x3d   :  { %v474_v19 = vld [vmem:[#allocation5 + $0x60] ss:$8 sps:$4 sm:$0xff]   ;;  %v475_v20 = vld [vmem:[#allocation5 + $0x74] ss:$8 sps:$4 sm:$0xff]   ;;  %v477_v21 = vld [vmem:[#allocation5 + $0x70] ss:$8 sps:$4 sm:$0xff]  }
  0x3e   :  { %v56_v22 = vld [vmem:[#allocation2] sm:$0xff]  ;;  %v481_v24 = vld [vmem:[#allocation7 + $0x18] sm:$0xff]   ;;  %s590_s2 = smov [#allocation8]  }
  0x3f   :  { %v58_v23 = vpack.c.bf16 %v56_v22, %v56_v22  ;;  %s378_s23 = sshll.u32 %s590_s2, 4  ;;  %s379_s23 = int_to_ptr.vmem [resolvable:$true] %s378_s23 }
  0x40   :  { %s552_s24 = scalar_lea.vmem %s379_s23, 256  ;;  %p557_p11 = scmp.lt.s32.totalorder %s379_s23, %s379_s23 }
  0x41   :  { %159 = vmatpush1.bf16.xpose.msra.mxu0 %v657_v4  ;;  %p553_p10 = scmp.ne.s32.totalorder %s379_s23, %s552_s24  ;;  %p558_p12 = scmp.lt.s32.totalorder %s552_s24, %s552_s24 }
  0x42   :  { %160 = vmatprep.subr.bf16.mxu0 %v659_v5 }
  0x43   :  { %422 = vmatpush3.bf16.xpose.msra.mxu1 %v479_v11  ;;  %p559_p13 = por %p558_p12, %p557_p11 }
  0x44   :  { %423 = vmatprep.subr.bf16.mxu1 %v587_v0 }
  0x45   :  { %p560_p0 = pnand %p559_p13, %p553_p10 }
  0x49   :  { %161 = vmatpush1.bf16.xpose.msra.mxu0 %v663_v9 }
  0x4a   :  { %162 = vmatprep.subr.bf16.mxu0 %v666_v10 }
  0x4b   :  { %424 = vmatpush3.bf16.xpose.msra.mxu1 %v480_v14 }
  0x4c   :  { %425 = vmatprep.subr.bf16.mxu1 %v587_v0 }
  0x51   :  { %163 = vmatpush1.bf16.xpose.msra.mxu0 %v465_v12 }
  0x52   :  { %164 = vmatprep.subr.bf16.mxu0 %v466_v13 }
  0x53   :  { %426 = vmatpush3.bf16.xpose.msra.mxu1 %v481_v24 }
  0x54   :  { %431 = vmatprep.subr.bf16.mxu1 %v587_v0 }
  0x59   :  { %165 = vmatpush1.bf16.xpose.msra.mxu0 %v468_v15 }
  0x5a   :  { %166 = vmatprep.subr.bf16.mxu0 %v469_v16 }
  0x61   :  { %167 = vmatpush1.bf16.xpose.msra.mxu0 %v471_v17 }
  0x62   :  { %168 = vmatprep.subr.bf16.mxu0 %v472_v18 }
  0x69   :  { %169 = vmatpush1.bf16.xpose.msra.mxu0 %v474_v19 }
  0x6a   :  { %170 = vmatprep.subr.bf16.mxu0 %v475_v20 }
  0x71   :  { %171 = vmatpush1.bf16.xpose.msra.mxu0 %v477_v21 }
  0x78   :  { %189 = vmatmul.mubr.bf16.vlgmr.msra.gmra.mrb[0].mxu0 %v58_v23 }
 0x14b   :  { %v190_v25 = vpop.f32.mrb[0].mxu0 }
 0x14c   :  { %v196_v26 = vpack.c.bf16 %v190_v25, %v190_v25  ;;  %v192_v27 = vpop.f32.mrb[1].mxu0 }
 0x14d   :  { %v193_v28 = vpop.f32.mrb[2].mxu0 }
 0x14e   :  { %v197_v29 = vmul.bf16 1036860877, %v196_v26  ;;  %v194_v30 = vpop.f32.mrb[3].mxu0 }
 0x150   :  { %v198_v31 = vmax.bf16 %v197_v29, %v196_v26 }
 0x152   :  { %428 = vmatmul.mubr.bf16.vlgmr.msra.gmra.mrb[0].mxu1 %v198_v31 }
 0x153   :  { %432 = vmatpush3.bf16.msra.mxu1 %v478_v8  ;;  %439 = vmatprep.mubr.msk.bf16.mxu1 %vm588_vm0, %v587_v0 }
 0x154   :  { %433 = vmatprep.subr.bf16.mxu1 %v587_v0 }
 0x157   :  { %434 = vmatpush3.bf16.msra.mxu1 %v479_v11 }
 0x158   :  { %435 = vmatprep.subr.bf16.mxu1 %v587_v0 }
 0x15b   :  { %436 = vmatpush3.bf16.msra.mxu1 %v480_v14 }
 0x15c   :  { %437 = vmatprep.subr.bf16.mxu1 %v587_v0 }
 0x15f   :  { %438 = vmatpush3.bf16.msra.mxu1 %v481_v24 }
 0x160   :  { %321 = vmatprep.subr.bf16.mxu1 %v648_v1 }
 0x225   :  { %v265_v32 = vpop.f32.mrb[0].mxu1 }
 0x226   :  { %v271_v33 = vpack.c.bf16 %v265_v32, %v265_v32  ;;  %v429_v34 = vpop.f32.mrb[1].mxu1 }
 0x227   :  { %v268_v35 = vpop.f32.mrb[2].mxu1 }
 0x228   :  { %v272_v36 = vmul.bf16 1036860877, %v271_v33  ;;  %v430_v37 = vpop.f32.mrb[3].mxu1 }
 0x22a   :  { %v273_v38 = vmax.bf16 %v272_v36, %v271_v33 }
 0x22c   :  { %440 = vmatmul.mubr.msk.bf16.vlgmr.msra.gmra.mrb[4].mxu1 %vm274_vm1, %v273_v38 }
 0x22d   :  { %322 = vmatpush1.bf16.msra.mxu1 %v650_v2  ;;  %353 = vmatprep.mubr.bf16.mxu1 %v589_v39 }
 0x22e   :  { %323 = vmatprep.subr.bf16.mxu1 %v653_v3 }
 0x231   :  { %324 = vmatpush1.bf16.msra.mxu1 %v657_v4 }
 0x232   :  { %325 = vmatprep.subr.bf16.mxu1 %v659_v5 }
 0x235   :  { %326 = vmatpush1.bf16.msra.mxu1 %v663_v9 }
 0x236   :  { %327 = vmatprep.subr.bf16.mxu1 %v666_v10 }
 0x239   :  { %328 = vmatpush1.bf16.msra.mxu1 %v465_v12 }
 0x23a   :  { %329 = vmatprep.subr.bf16.mxu1 %v466_v13 }
 0x23d   :  { %330 = vmatpush1.bf16.msra.mxu1 %v468_v15 }
 0x23e   :  { %331 = vmatprep.subr.bf16.mxu1 %v469_v16 }
 0x241   :  { %332 = vmatpush1.bf16.msra.mxu1 %v471_v17 }
 0x242   :  { %333 = vmatprep.subr.bf16.mxu1 %v472_v18 }
 0x245   :  { %334 = vmatpush1.bf16.msra.mxu1 %v474_v19 }
 0x246   :  { %335 = vmatprep.subr.bf16.mxu1 %v475_v20 }
 0x249   :  { %336 = vmatpush1.bf16.msra.mxu1 %v477_v21 }
 0x2ff   :  { %v312_v40 = vpop.f32.mrb[4].mxu1 }
 0x300   :  { %v318_v41 = vpack.c.bf16 %v312_v40, %v312_v40  ;;  %v441_v42 = vpop.f32.mrb[5].mxu1 }
 0x301   :  { %v315_v43 = vpop.f32.mrb[6].mxu1 }
 0x302   :  { %v319_v44 = vmul.bf16 1036860877, %v318_v41  ;;  %v442_v45 = vpop.f32.mrb[7].mxu1 }
 0x304   :  { %v320_v46 = vmax.bf16 %v319_v44, %v318_v41 }
 0x306   :  { %354 = vmatmul.mubr.bf16.vlgmr.msra.gmra.mrb[8].mxu1 %v320_v46 }
 0x3d9   :  { %v355_v47 = vpop.f32.mrb[8].mxu1 }
 0x3da   :  { %v362_v48 = vmul.f32 0.5, %v355_v47  ;;  %v357_v49 = vpop.f32.mrb[9].mxu1 }
 0x3db   :  { %v363_v50 = vmul.f32 0.5, %v357_v49  ;;  %v359_v51 = vpop.f32.mrb[10].mxu1 }
 0x3dc   :  { %482 = vtanh.f32 %v362_v48  ;;  %v360_v52 = vpop.f32.mrb[11].mxu1 }
 0x3dd   :  { %484 = vtanh.f32 %v363_v50 }
 0x3e6   :  { %v483_v53 = vpop.eup %482 }
 0x3e7   :  { %v485_v54 = vpop.eup %484  ;;  %v366_v55 = vadd.f32 1.0, %v483_v53 }
 0x3e8   :  { %v367_v56 = vadd.f32 1.0, %v485_v54 }
 0x3e9   :  { %v368_v57 = vmul.f32 0.5, %v366_v55 }
 0x3ea   :  { %v369_v58 = vmul.f32 0.5, %v367_v56 }
 0x3eb   :  { %370 = vst [vmem:[#allocation8] sm:$0xff] %v368_v57 }
 0x3ec   :  { %371 = vst [vmem:[#allocation8 + $0x8] sm:$0xff] %v369_v58 }
 0x3ed   :  { %563 = shalt.err (!%p560_p0)
}
 0x3ee   :  { %s564_s27 = scalar_lea.hbm %s700_s3, 256 }
 0x3ef   :  { %p565_p1 = scmp.ne.s32.totalorder %s700_s3, %s564_s27  ;;  %p568_p2 = scmp.lt.u32.totalorder %s564_s27, %s700_s3 }
 0x3f1   :  { %p570_p3 = pnand %p568_p2, %p565_p1 }
 0x3f3   :  { %573 = shalt.err (!%p570_p3)
}
 0x3f4   :  { %381 = dma.vmem_to_hbm [thread:$0]  %s379_s23, 256, %s700_s3, [#allocation4]  }
 0x3f5   :  { %578 = dma.done.wait [#allocation4], 256  }
 0x3f6   :  { %579 = vsyncadd [#allocation4], 4294967040 }
 0x3f7   :  { %385 = vsyncpa [#allocation3], 1 }
 0x3f8   :  { %386 = vsyncpa [#allocation6], 1 }
 0x3f9   :  { %387 = vsyncpa [#allocation4], 1 }

</bundles_post_ra>
